<compile_context>
chip_gen: v5e
topology: v5e:2x2
jax: 0.10.0
libtpu: 0.0.40
codegen_flags: <defaults>
</compile_context>

<pallas_src>
import math

import jax
import jax.numpy as jnp
from jax.experimental import pallas as pl
from jax.experimental.pallas import tpu as pltpu


def _ssa_kernel(x_ref, ws1t_ref, ws2t_ref, w1t_ref, b1_ref, w2t_ref, b2_ref,
                out_ref, attn_ref):
    """Whole forward pass for the full (small) batch in one invocation.

    x_ref    : (B, S, D)      hidden_sequence in compute dtype, D = 2*hidden
    ws1t_ref : (D, mlp_d)     Ws1^T
    ws2t_ref : (mlp_d, R)     Ws2^T, R = attn_hops
    w1t_ref  : (R*D, H1)      fc1.weight^T (original (H1, R*D) layout, transposed once)
    b1_ref   : (1, H1)        fc1 bias, f32
    w2t_ref  : (H1, C)        fc2.weight^T, C = n_classes
    b2_ref   : (1, C)         fc2 bias, f32
    out_ref  : (B, C)         log-softmax output, f32
    attn_ref : (B, R, S)      attention matrix A, f32
    """
    B, S, D = x_ref.shape
    R = attn_ref.shape[1]
    cd = x_ref.dtype                       # MXU-input dtype (f32 or bf16)

    x = x_ref[...]                         # (B, S, D)
    x_flat = x.reshape(B * S, D)           # merge leading dims; D stays on lanes

    # ---- attention scores for the whole batch: two natural-layout MXU matmuls
    a1 = jnp.tanh(jnp.dot(x_flat, ws1t_ref[...],
                          preferred_element_type=jnp.float32))          # (B*S, mlp_d) f32
    a2 = jnp.dot(a1.astype(cd), ws2t_ref[...],
                 preferred_element_type=jnp.float32)                    # (B*S, R) f32

    # ---- rearrange to (B, R, S); softmax jointly over (batch, hop) per position
    a2_brs = jnp.transpose(a2.reshape(B, S, R), (0, 2, 1))              # (B, R, S) f32
    mx = jnp.max(jnp.max(a2_brs, axis=1, keepdims=True),
                 axis=0, keepdims=True)                                 # (1, 1, S)
    e = jnp.exp(a2_brs - mx)
    denom = jnp.sum(jnp.sum(e, axis=1, keepdims=True),
                    axis=0, keepdims=True)                              # (1, 1, S)
    attn = e / denom                                                    # (B, R, S) f32
    attn_ref[...] = attn.astype(attn_ref.dtype)                         # single full store

    # ---- M = A @ hs (batched), then ONE K = R*D fc1 contraction for the whole batch
    m = jnp.einsum('brs,bsd->brd', attn.astype(cd), x,
                   preferred_element_type=jnp.float32)                  # (B, R, D) f32
    m_flat = m.reshape(B, R * D)                                        # (B, R*D)

    h = jnp.dot(m_flat.astype(cd), w1t_ref[...],
                preferred_element_type=jnp.float32) + b1_ref[...]       # (B, H1) f32
    h = jnp.maximum(h, 0.0)

    logits = jnp.dot(h.astype(cd), w2t_ref[...],
                     preferred_element_type=jnp.float32) + b2_ref[...]  # (B, C) f32

    # ---- batched, numerically stable log-softmax
    lmx = jnp.max(logits, axis=1, keepdims=True)
    sh = logits - lmx
    lse = jnp.log(jnp.sum(jnp.exp(sh), axis=1, keepdims=True))
    out_ref[...] = (sh - lse).astype(out_ref.dtype)


def structured_self_attention(x, ws1, ws2, fc1_w, fc1_b, fc2_w, fc2_b,
                              *, compute_dtype=jnp.float32):
    """Wrapper: pre-transpose weights (free), launch one Pallas kernel over the batch.

    compute_dtype controls the MXU input dtype (bf16 halves x DMA bytes and doubles
    MXU throughput); accumulation and transcendentals stay in f32.
    """
    B, S, D = x.shape
    mlp_d = ws1.shape[0]
    R = ws2.shape[0]
    H1 = fc1_w.shape[0]
    C = fc2_w.shape[0]
    cd = compute_dtype

    x_cd = x.astype(cd)
    ws1_t = jnp.transpose(ws1).astype(cd)      # (D, mlp_d)
    ws2_t = jnp.transpose(ws2).astype(cd)      # (mlp_d, R)
    w1_t = jnp.transpose(fc1_w).astype(cd)     # (R*D, H1)
    w2_t = jnp.transpose(fc2_w).astype(cd)     # (H1, C)
    b1 = fc1_b.reshape(1, H1).astype(jnp.float32)
    b2 = fc2_b.reshape(1, C).astype(jnp.float32)

    operands = (x_cd, ws1_t, ws2_t, w1_t, b1, w2_t, b2)
    out_shapes = (jax.ShapeDtypeStruct((B, C), jnp.float32),
                  jax.ShapeDtypeStruct((B, R, S), jnp.float32))

    # Explicit VMEM budget: double-buffered blocks + headroom for intermediates.
    blk_bytes = sum(int(op.size) * op.dtype.itemsize for op in operands)
    blk_bytes += sum(math.prod(s.shape) * jnp.dtype(s.dtype).itemsize for s in out_shapes)
    vmem_limit = int(min(64 << 20, max(32 << 20, 2 * blk_bytes + (8 << 20))))

    # TODO(synk): for large B*S on v7x, split into a batch-parallel score phase and a
    # small cross-batch softmax/fc phase; the joint (B*R) softmax forces one invocation here.
    out, attn = pl.pallas_call(
        _ssa_kernel,
        out_shape=out_shapes,
        grid=(1,),
        in_specs=[
            pl.BlockSpec((B, S, D), lambda i: (0, 0, 0)),
            pl.BlockSpec((D, mlp_d), lambda i: (0, 0)),
            pl.BlockSpec((mlp_d, R), lambda i: (0, 0)),
            pl.BlockSpec((R * D, H1), lambda i: (0, 0)),
            pl.BlockSpec((1, H1), lambda i: (0, 0)),
            pl.BlockSpec((H1, C), lambda i: (0, 0)),
            pl.BlockSpec((1, C), lambda i: (0, 0)),
        ],
        out_specs=(pl.BlockSpec((B, C), lambda i: (0, 0)),
                   pl.BlockSpec((B, R, S), lambda i: (0, 0, 0))),
        compiler_params=pltpu.CompilerParams(
            dimension_semantics=("arbitrary",),
            vmem_limit_bytes=vmem_limit),
    )(*operands)
    return out, attn


def _reference(x, ws1, ws2, fc1_w, fc1_b, fc2_w, fc2_b):
    """Plain-JAX mirror of the PyTorch forward (for verification)."""
    B, S, D = x.shape
    hs_T = jnp.swapaxes(x, 1, 2)                                  # (B, D, S)
    A = jnp.tanh(jnp.einsum('md,bds->bms', ws1, hs_T))            # (B, mlp_d, S)
    A = jnp.einsum('rm,bms->brs', ws2, A)                         # (B, R, S)
    A = jax.nn.softmax(A.reshape(-1, S), axis=0).reshape(B, -1, S)
    M = jnp.einsum('brs,bsd->brd', A, x)                          # (B, R, D)
    h = M.reshape(B, -1) @ fc1_w.T + fc1_b
    h = jax.nn.relu(h)
    logits = h @ fc2_w.T + fc2_b
    return jax.nn.log_softmax(logits, axis=1), A


if __name__ == "__main__":
    # Small, module-consistent shapes.
    batch = 2
    sentence = 8
    hidden_size = 16          # -> D = 2*hidden = 32
    mlp_d = 32
    attn_hops = 4
    mlp_hidden = 32
    n_classes = 8
    D = 2 * hidden_size

    key = jax.random.PRNGKey(0)
    kx, k1, k2, k3, k4, k5, k6 = jax.random.split(key, 7)

    x = jax.random.normal(kx, (batch, sentence, D), dtype=jnp.float32)

    initrange = 0.1
    ws1 = jax.random.uniform(k1, (mlp_d, D), jnp.float32, -initrange, initrange)
    ws2 = jax.random.uniform(k2, (attn_hops, mlp_d), jnp.float32, -initrange, initrange)

    fan1 = attn_hops * D
    bnd1 = 1.0 / (fan1 ** 0.5)
    fc1_w = jax.random.uniform(k3, (mlp_hidden, fan1), jnp.float32, -bnd1, bnd1)
    fc1_b = jax.random.uniform(k4, (mlp_hidden,), jnp.float32, -bnd1, bnd1)

    bnd2 = 1.0 / (mlp_hidden ** 0.5)
    fc2_w = jax.random.uniform(k5, (n_classes, mlp_hidden), jnp.float32, -bnd2, bnd2)
    fc2_b = jax.random.uniform(k6, (n_classes,), jnp.float32, -bnd2, bnd2)

    ref_out, ref_attn = _reference(x, ws1, ws2, fc1_w, fc1_b, fc2_w, fc2_b)

    # f32 compute path: tight check against the plain-JAX reference.
    out32, attn32 = structured_self_attention(
        x, ws1, ws2, fc1_w, fc1_b, fc2_w, fc2_b, compute_dtype=jnp.float32)
    jax.block_until_ready((out32, attn32))
    assert out32.shape == (batch, n_classes)
    assert attn32.shape == (batch, attn_hops, sentence)
    assert jnp.allclose(out32, ref_out, atol=1e-4, rtol=1e-4)
    assert jnp.allclose(attn32, ref_attn, atol=1e-5, rtol=1e-4)

    # bf16 MXU-input path (f32 accumulation + f32 transcendentals): bf16-rounding tolerance.
    out16, attn16 = structured_self_attention(
        x, ws1, ws2, fc1_w, fc1_b, fc2_w, fc2_b, compute_dtype=jnp.bfloat16)
    jax.block_until_ready((out16, attn16))
    assert jnp.allclose(out16, ref_out, atol=3e-2, rtol=3e-2)
    assert jnp.allclose(attn16, ref_attn, atol=5e-3, rtol=5e-2)

    print("KERNEL_OK")
</pallas_src>

<mosaic_0001>
module attributes {stable_mosaic.version = 11 : i64} {
  func.func @_ssa_kernel(%arg0: i32, %arg1: memref<2x8x32xf32, #tpu.memory_space<vmem>>, %arg2: memref<32x32xf32, #tpu.memory_space<vmem>>, %arg3: memref<32x4xf32, #tpu.memory_space<vmem>>, %arg4: memref<128x32xf32, #tpu.memory_space<vmem>>, %arg5: memref<1x32xf32, #tpu.memory_space<vmem>>, %arg6: memref<32x8xf32, #tpu.memory_space<vmem>>, %arg7: memref<1x8xf32, #tpu.memory_space<vmem>>, %arg8: memref<2x8xf32, #tpu.memory_space<vmem>>, %arg9: memref<2x4x8xf32, #tpu.memory_space<vmem>>) attributes {dimension_semantics = [#tpu.dimension_semantics<arbitrary>], iteration_bounds = array<i64: 1>, scalar_prefetch = 0 : i64, scratch_operands = 0 : i64, tpu.core_type = #tpu.core_type<tc>, window_params = [{pipeline_mode = #tpu.pipeline_mode<synchronous>, transform_indices = @transform_0, window_bounds = array<i64: 2, 8, 32>}, {pipeline_mode = #tpu.pipeline_mode<synchronous>, transform_indices = @transform_1, window_bounds = array<i64: 32, 32>}, {pipeline_mode = #tpu.pipeline_mode<synchronous>, transform_indices = @transform_2, window_bounds = array<i64: 32, 4>}, {pipeline_mode = #tpu.pipeline_mode<synchronous>, transform_indices = @transform_3, window_bounds = array<i64: 128, 32>}, {pipeline_mode = #tpu.pipeline_mode<synchronous>, transform_indices = @transform_4, window_bounds = array<i64: 1, 32>}, {pipeline_mode = #tpu.pipeline_mode<synchronous>, transform_indices = @transform_5, window_bounds = array<i64: 32, 8>}, {pipeline_mode = #tpu.pipeline_mode<synchronous>, transform_indices = @transform_6, window_bounds = array<i64: 1, 8>}, {pipeline_mode = #tpu.pipeline_mode<synchronous>, transform_indices = @transform_7, window_bounds = array<i64: 2, 8>}, {pipeline_mode = #tpu.pipeline_mode<synchronous>, transform_indices = @transform_8, window_bounds = array<i64: 2, 4, 8>}]} {
    %c0 = arith.constant 0 : index
    %c0_0 = arith.constant 0 : index
    %c0_1 = arith.constant 0 : index
    %0 = vector.load %arg1[%c0, %c0_0, %c0_1] : memref<2x8x32xf32, #tpu.memory_space<vmem>>, vector<2x8x32xf32>
    %1 = vector.shape_cast %0 : vector<2x8x32xf32> to vector<16x32xf32>
    %c0_2 = arith.constant 0 : index
    %c0_3 = arith.constant 0 : index
    %2 = vector.load %arg2[%c0_2, %c0_3] : memref<32x32xf32, #tpu.memory_space<vmem>>, vector<32x32xf32>
    %cst = arith.constant dense<0.000000e+00> : vector<16x32xf32>
    %3 = tpu.matmul %1, %2, %cst {dimension_numbers = #tpu.dot_dimension_numbers<[1], [0], [0], [1], [0, 0, 1, 1], [], []>} : vector<16x32xf32>, vector<32x32xf32>, vector<16x32xf32> -> vector<16x32xf32>
    %4 = math.tanh %3 : vector<16x32xf32>
    %c0_4 = arith.constant 0 : index
    %c0_5 = arith.constant 0 : index
    %5 = vector.load %arg3[%c0_4, %c0_5] : memref<32x4xf32, #tpu.memory_space<vmem>>, vector<32x4xf32>
    %cst_6 = arith.constant dense<0.000000e+00> : vector<16x4xf32>
    %6 = tpu.matmul %4, %5, %cst_6 {dimension_numbers = #tpu.dot_dimension_numbers<[1], [0], [0], [1], [0, 0, 1, 1], [], []>} : vector<16x32xf32>, vector<32x4xf32>, vector<16x4xf32> -> vector<16x4xf32>
    %7 = vector.shape_cast %6 : vector<16x4xf32> to vector<2x8x4xf32>
    %8 = tpu.transpose %7, [0, 2, 1] : vector<2x8x4xf32> -> vector<2x4x8xf32>
    %cst_7 = arith.constant dense<0xFF800000> : vector<2x8xf32>
    %9 = vector.multi_reduction <maximumf>, %8, %cst_7 [1] : vector<2x4x8xf32> to vector<2x8xf32>
    %10 = vector.shape_cast %9 : vector<2x8xf32> to vector<2x1x8xf32>
    %cst_8 = arith.constant dense<0xFF800000> : vector<1x8xf32>
    %11 = vector.multi_reduction <maximumf>, %10, %cst_8 [0] : vector<2x1x8xf32> to vector<1x8xf32>
    %12 = vector.shape_cast %11 : vector<1x8xf32> to vector<1x1x8xf32>
    %13 = vector.broadcast %12 : vector<1x1x8xf32> to vector<2x4x8xf32>
    %14 = arith.subf %8, %13 : vector<2x4x8xf32>
    %15 = math.exp %14 : vector<2x4x8xf32>
    %cst_9 = arith.constant dense<0.000000e+00> : vector<2x8xf32>
    %16 = vector.multi_reduction <add>, %15, %cst_9 [1] : vector<2x4x8xf32> to vector<2x8xf32>
    %17 = vector.shape_cast %16 : vector<2x8xf32> to vector<2x1x8xf32>
    %cst_10 = arith.constant dense<0.000000e+00> : vector<1x8xf32>
    %18 = vector.multi_reduction <add>, %17, %cst_10 [0] : vector<2x1x8xf32> to vector<1x8xf32>
    %19 = vector.shape_cast %18 : vector<1x8xf32> to vector<1x1x8xf32>
    %20 = vector.broadcast %19 : vector<1x1x8xf32> to vector<2x4x8xf32>
    %21 = arith.divf %15, %20 : vector<2x4x8xf32>
    %c0_11 = arith.constant 0 : index
    %c0_12 = arith.constant 0 : index
    %c0_13 = arith.constant 0 : index
    %22 = vector.load %arg9[%c0_11, %c0_12, %c0_13] : memref<2x4x8xf32, #tpu.memory_space<vmem>>, vector<2x4x8xf32>
    tpu.vector_store %arg9[%c0_11, %c0_12, %c0_13], %21 {strides = array<i32>} : memref<2x4x8xf32, #tpu.memory_space<vmem>>, vector<2x4x8xf32>,
    "tpu.trace_start"() <{level = 10 : i32, message = "brs,bsd->brd"}> : () -> ()
    %cst_14 = arith.constant dense<0.000000e+00> : vector<2x4x32xf32>
    %23 = tpu.matmul %21, %0, %cst_14 {dimension_numbers = #tpu.dot_dimension_numbers<[2], [1], [1], [2], [0, 0, 0, 1, 1, 2], [0], [0]>} : vector<2x4x8xf32>, vector<2x8x32xf32>, vector<2x4x32xf32> -> vector<2x4x32xf32>
    "tpu.trace_stop"() : () -> ()
    %24 = vector.shape_cast %23 : vector<2x4x32xf32> to vector<2x128xf32>
    %c0_15 = arith.constant 0 : index
    %c0_16 = arith.constant 0 : index
    %25 = vector.load %arg4[%c0_15, %c0_16] : memref<128x32xf32, #tpu.memory_space<vmem>>, vector<128x32xf32>
    %cst_17 = arith.constant dense<0.000000e+00> : vector<2x32xf32>
    %26 = tpu.matmul %24, %25, %cst_17 {dimension_numbers = #tpu.dot_dimension_numbers<[1], [0], [0], [1], [0, 0, 1, 1], [], []>} : vector<2x128xf32>, vector<128x32xf32>, vector<2x32xf32> -> vector<2x32xf32>
    %c0_18 = arith.constant 0 : index
    %c0_19 = arith.constant 0 : index
    %27 = vector.load %arg5[%c0_18, %c0_19] : memref<1x32xf32, #tpu.memory_space<vmem>>, vector<1x32xf32>
    %28 = vector.broadcast %27 : vector<1x32xf32> to vector<2x32xf32>
    %29 = arith.addf %26, %28 : vector<2x32xf32>
    %cst_20 = arith.constant 0.000000e+00 : f32
    %30 = vector.broadcast %cst_20 : f32 to vector<2x32xf32>
    %31 = arith.maximumf %29, %30 : vector<2x32xf32>
    %c0_21 = arith.constant 0 : index
    %c0_22 = arith.constant 0 : index
    %32 = vector.load %arg6[%c0_21, %c0_22] : memref<32x8xf32, #tpu.memory_space<vmem>>, vector<32x8xf32>
    %cst_23 = arith.constant dense<0.000000e+00> : vector<2x8xf32>
    %33 = tpu.matmul %31, %32, %cst_23 {dimension_numbers = #tpu.dot_dimension_numbers<[1], [0], [0], [1], [0, 0, 1, 1], [], []>} : vector<2x32xf32>, vector<32x8xf32>, vector<2x8xf32> -> vector<2x8xf32>
    %c0_24 = arith.constant 0 : index
    %c0_25 = arith.constant 0 : index
    %34 = vector.load %arg7[%c0_24, %c0_25] : memref<1x8xf32, #tpu.memory_space<vmem>>, vector<1x8xf32>
    %35 = vector.broadcast %34 : vector<1x8xf32> to vector<2x8xf32>
    %36 = arith.addf %33, %35 : vector<2x8xf32>
    %cst_26 = arith.constant dense<0xFF800000> : vector<2xf32>
    %37 = vector.multi_reduction <maximumf>, %36, %cst_26 [1] : vector<2x8xf32> to vector<2xf32>
    %38 = vector.shape_cast %37 : vector<2xf32> to vector<2x1xf32>
    %39 = vector.broadcast %38 : vector<2x1xf32> to vector<2x8xf32>
    %40 = arith.subf %36, %39 : vector<2x8xf32>
    %41 = math.exp %40 : vector<2x8xf32>
    %cst_27 = arith.constant dense<0.000000e+00> : vector<2xf32>
    %42 = vector.multi_reduction <add>, %41, %cst_27 [1] : vector<2x8xf32> to vector<2xf32>
    %43 = vector.shape_cast %42 : vector<2xf32> to vector<2x1xf32>
    %44 = math.log %43 : vector<2x1xf32>
    %45 = vector.broadcast %44 : vector<2x1xf32> to vector<2x8xf32>
    %46 = arith.subf %40, %45 : vector<2x8xf32>
    %c0_28 = arith.constant 0 : index
    %c0_29 = arith.constant 0 : index
    %47 = vector.load %arg8[%c0_28, %c0_29] : memref<2x8xf32, #tpu.memory_space<vmem>>, vector<2x8xf32>
    tpu.vector_store %arg8[%c0_28, %c0_29], %46 {strides = array<i32>} : memref<2x8xf32, #tpu.memory_space<vmem>>, vector<2x8xf32>,
    return
  }
  func.func @transform_0(%arg0: i32) -> (i32, i32, i32) {
    %c0_i32 = arith.constant 0 : i32
    %c0_i32_0 = arith.constant 0 : i32
    %c0_i32_1 = arith.constant 0 : i32
    %c0_i32_2 = arith.constant 0 : i32
    return %c0_i32, %c0_i32_0, %c0_i32_1 : i32, i32, i32
  }
  func.func @transform_1(%arg0: i32) -> (i32, i32) {
    %c0_i32 = arith.constant 0 : i32
    %c0_i32_0 = arith.constant 0 : i32
    %c0_i32_1 = arith.constant 0 : i32
    return %c0_i32, %c0_i32_0 : i32, i32
  }
  func.func @transform_2(%arg0: i32) -> (i32, i32) {
    %c0_i32 = arith.constant 0 : i32
    %c0_i32_0 = arith.constant 0 : i32
    %c0_i32_1 = arith.constant 0 : i32
    return %c0_i32, %c0_i32_0 : i32, i32
  }
  func.func @transform_3(%arg0: i32) -> (i32, i32) {
    %c0_i32 = arith.constant 0 : i32
    %c0_i32_0 = arith.constant 0 : i32
    %c0_i32_1 = arith.constant 0 : i32
    return %c0_i32, %c0_i32_0 : i32, i32
  }
  func.func @transform_4(%arg0: i32) -> (i32, i32) {
    %c0_i32 = arith.constant 0 : i32
    %c0_i32_0 = arith.constant 0 : i32
    %c0_i32_1 = arith.constant 0 : i32
    return %c0_i32, %c0_i32_0 : i32, i32
  }
  func.func @transform_5(%arg0: i32) -> (i32, i32) {
    %c0_i32 = arith.constant 0 : i32
    %c0_i32_0 = arith.constant 0 : i32
    %c0_i32_1 = arith.constant 0 : i32
    return %c0_i32, %c0_i32_0 : i32, i32
  }
  func.func @transform_6(%arg0: i32) -> (i32, i32) {
    %c0_i32 = arith.constant 0 : i32
    %c0_i32_0 = arith.constant 0 : i32
    %c0_i32_1 = arith.constant 0 : i32
    return %c0_i32, %c0_i32_0 : i32, i32
  }
  func.func @transform_7(%arg0: i32) -> (i32, i32) {
    %c0_i32 = arith.constant 0 : i32
    %c0_i32_0 = arith.constant 0 : i32
    %c0_i32_1 = arith.constant 0 : i32
    return %c0_i32, %c0_i32_0 : i32, i32
  }
  func.func @transform_8(%arg0: i32) -> (i32, i32, i32) {
    %c0_i32 = arith.constant 0 : i32
    %c0_i32_0 = arith.constant 0 : i32
    %c0_i32_1 = arith.constant 0 : i32
    %c0_i32_2 = arith.constant 0 : i32
    return %c0_i32, %c0_i32_0, %c0_i32_1 : i32, i32, i32
  }
}

</mosaic_0001>

<bundles_post_ra>
// kernel: tpu_custom_call.1
= control target key start
LH: loop header
LB: loop body
LE: loop exit
PB: predicated region body
PF: predicated region fallthrough
CT: control target
= control target key end

     0   :  { %14 = vsyncpa [#allocation3], 0  ;;  %s696_s0 = inlined_call_operand.vmem [shape: f32[2,8,32], index: 0, kind: input, shape index: {}]   ;;  %s697_s1 = inlined_call_operand.vmem [shape: f32[32,32], index: 1, kind: input, shape index: {}]   ;;  %s698_s2 = inlined_call_operand.vmem [shape: f32[32,4], index: 2, kind: input, shape index: {}]   ;;  %s699_s3 = inlined_call_operand.vmem [shape: f32[128,32], index: 3, kind: input, shape index: {}]   ;;  %s700_s4 = inlined_call_operand.vmem [shape: f32[1,32], index: 4, kind: input, shape index: {}]   ;;  %s701_s5 = inlined_call_operand.vmem [shape: f32[32,8], index: 5, kind: input, shape index: {}]   ;;  %s702_s6 = inlined_call_operand.vmem [shape: f32[1,8], index: 6, kind: input, shape index: {}]   ;;  %s703_s7 = inlined_call_operand.hbm [shape: f32[2,8], index: 7, kind: output, shape index: {0}]   ;;  %s704_s8 = inlined_call_operand.hbm [shape: f32[2,4,8], index: 8, kind: output, shape index: {1}]  }
   0x1   :  { %v35_v0 = vld [vmem:[%s697_s1 + $0x18] sm:$0xff]  ;;  %v34_v1 = vld [vmem:[%s697_s1 + $0x10] sm:$0xff]  ;;  %v33_v2 = vld [vmem:[%s697_s1 + $0x8] sm:$0xff] }
   0x2   :  { %55 = vmatpush.msra.mxu0 %v35_v0  ;;  %v30_v3 = vld [vmem:[%s696_s0] sm:$0xff]  ;;  %v31_v4 = vld [vmem:[%s696_s0 + $0x8] sm:$0xff] }
   0x3   :  { %243 = vmatpush.msra.mxu3 %v30_v3 }
   0x4   :  { %15 = vsyncpa [#allocation5], 0  ;;  %56 = vmatpush.msra.mxu0 %v34_v1  ;;  %v32_v5 = vld [vmem:[%s697_s1] sm:$0xff]  ;;  %vm36_vm0 = vcmask 261120   ;;  %v71_v6 = vld [vmem:[%s698_s2 + $0x18] sm:$0xff]  ;;  %vm165_vm1 = vcmask 60416  }
   0x5   :  { %266 = vmatpush.msrb.mxu3 %v31_v4  ;;  %90 = vmatpush.msra.mxu1 %v71_v6  ;;  %v70_v7 = vld [vmem:[%s698_s2 + $0x10] sm:$0xff]  ;;  %v69_v8 = vld [vmem:[%s698_s2 + $0x8] sm:$0xff]  ;;  %v68_v9 = vld [vmem:[%s698_s2] sm:$0xff]  ;;  %vm180_vm2 = vcmask 64512   ;;  %v517_v6 = vmov 1983009808  }
   0x6   :  { %57 = vmatpush.msra.mxu0 %v33_v2  ;;  %vm280_vm7 = vcmask 1047556   ;;  %s519_s2 = smov 96   ;;  %s520_s23 = smov 32   ;;  %vm309_vm8 = vcmask 523264   ;;  %vm311_vm9 = vcmask 785408   ;;  %vm385_vm10 = vcmask 58368  }
   0x7   :  { %91 = vmatpush.msra.mxu1 %v70_v7  ;;  %v272_v7 = vunpack.c.l.s4 %v517_v6  ;;  %s521_s24 = smov 64   ;;  %s523_s22 = smov 4  }
   0x8   :  { %58 = vmatpush.msra.mxu0 %v32_v5  ;;  %s406_s27 = sshll.u32 %s703_s7, 4  ;;  %s407_s27 = int_to_ptr.hbm [resolvable:$true] %s406_s27 }
   0x9   :  { %433 = vmatmul.msk.f32.vlgmr.msra.gmra.mxu0 %vm36_vm0, %v30_v3  ;;  %92 = vmatpush.msra.mxu1 %v69_v8 }
   0xb   :  { %93 = vmatpush.msra.mxu1 %v68_v9  ;;  %v273_v9 = vunpack.c.0.s8 %v272_v7 }
  0x11   :  { %434 = vmatmul.msk.f32.gmra.mxu0 %vm36_vm0, %v31_v4 }
  0x86   :  { %v60_v10 = vpop.f32.mrf.mxu0 }
  0x87   :  { %451 = vtanh.f32 %v60_v10  ;;  %v518_v10 = vmov 1934713408  }
  0x8d   :  { %v452_v11 = vpop.eup %451 }
  0x8e   :  { %v63_v12 = vpop.f32.mrf.mxu0  ;;  %435 = vmatmul.msk.f32.vlgmr.msra.gmra.mxu1 %vm36_vm0, %v452_v11  ;;  %v285_v11 = vunpack.c.l.s4 %v518_v10 }
  0x8f   :  { %453 = vtanh.f32 %v63_v12 }
  0x95   :  { %v454_v13 = vpop.eup %453 }
  0x96   :  { %436 = vmatmul.msk.f32.gmra.mxu1 %vm36_vm0, %v454_v13 }
 0x10b   :  { %v95_v14 = vpop.f32.mrf.mxu1 }
 0x10c   :  { %101 = vxpose.xlu0.b32.start.end [1/1] (short) (narrow) %v95_v14, 8  ;;  %v286_v14 = vunpack.c.0.s8 %v285_v11 }
 0x113   :  { %v98_v15 = vpop.f32.mrf.mxu1 }
 0x114   :  { %133 = vxpose.xlu0.b32.start.end [1/1] (short) (narrow) %v98_v15, 8 }
 0x1b0   :  { %v117_v16 = vpop.trf.xlu0 }
 0x1b1   :  { %v166_v17 = vsel %vm165_vm1, %v117_v16, -inf }
 0x1b2   :  { %v167_v18 = vrot.slane %v166_v17, 4 }
 0x1b4   :  { %v168_v19 = vmax.f32 %v166_v17, %v167_v18 }
 0x1b6   :  { %v169_v20 = vrot.slane %v168_v19, 2 }
 0x1b8   :  { %v149_v21 = vpop.trf.xlu0  ;;  %v170_v23 = vmax.f32 %v168_v19, %v169_v20 }
 0x1b9   :  { %v173_v22 = vsel %vm165_vm1, %v149_v21, -inf }
 0x1ba   :  { %v174_v24 = vrot.slane %v173_v22, 4  ;;  %v171_v26 = vrot.slane %v170_v23, 1 }
 0x1bc   :  { %v175_v25 = vmax.f32 %v173_v22, %v174_v24  ;;  %v172_v29 = vmax.f32 %v170_v23, %v171_v26  ;;  %v328_v26 = vld [vmem:[%s699_s3 + $0x78] sm:$0xff] }
 0x1bd   :  { %333 = vmatpush.msra.mxu2 %v328_v26 }
 0x1be   :  { %v176_v27 = vrot.slane %v175_v25, 2  ;;  %v181_v32 = vsel %vm180_vm2, %v172_v29, -inf  ;;  %v325_v29 = vld [vmem:[%s699_s3 + $0x60] sm:$0xff] }
 0x1c0   :  { %v177_v28 = vmax.f32 %v175_v25, %v176_v27  ;;  %v327_v27 = vld [vmem:[%s699_s3 + $0x70] sm:$0xff] }
 0x1c1   :  { %334 = vmatpush.msra.mxu2 %v327_v27 }
 0x1c2   :  { %v178_v30 = vrot.slane %v177_v28, 1 }
 0x1c4   :  { %v179_v31 = vmax.f32 %v177_v28, %v178_v30  ;;  %v326_v28 = vld [vmem:[%s699_s3 + $0x68] sm:$0xff]  ;;  %v324_v30 = vld [vmem:[%s699_s3 + $0x58] sm:$0xff] }
 0x1c5   :  { %335 = vmatpush.msra.mxu2 %v326_v28 }
 0x1c6   :  { %v182_v33 = vsel %vm180_vm2, %v179_v31, -inf  ;;  %v323_v31 = vld [vmem:[%s699_s3 + $0x50] sm:$0xff] }
 0x1c7   :  { %v183_v34 = vmax.f32 %v181_v32, %v182_v33  ;;  %336 = vmatpush.msra.mxu2 %v325_v29  ;;  %v322_v32 = vld [vmem:[%s699_s3 + $0x48] sm:$0xff]  ;;  %v321_v33 = vld [vmem:[%s699_s3 + $0x40] sm:$0xff] }
 0x1c9   :  { %v184_v35 = vsub.f32 %v117_v16, %v183_v34  ;;  %v185_v36 = vsub.f32 %v149_v21, %v183_v34  ;;  %337 = vmatpush.msra.mxu2 %v324_v30  ;;  %v320_v34 = vld [vmem:[%s699_s3 + $0x38] sm:$0xff] }
 0x1cb   :  { %v186_v37 = vmul.f32 1.442695, %v184_v35  ;;  %v188_v38 = vmul.f32 1.442695, %v185_v36  ;;  %338 = vmatpush.msra.mxu2 %v323_v31  ;;  %v319_v35 = vld [vmem:[%s699_s3 + $0x30] sm:$0xff]  ;;  %v318_v36 = vld [vmem:[%s699_s3 + $0x28] sm:$0xff] }
 0x1cd   :  { %455 = vpow2.f32 %v186_v37  ;;  %339 = vmatpush.msra.mxu2 %v322_v32  ;;  %v317_v37 = vld [vmem:[%s699_s3 + $0x20] sm:$0xff] }
 0x1ce   :  { %457 = vpow2.f32 %v188_v38  ;;  %v316_v38 = vld [vmem:[%s699_s3 + $0x18] sm:$0xff] }
 0x1cf   :  { %340 = vmatpush.msra.mxu2 %v321_v33 }
 0x1d1   :  { %341 = vmatpush.msra.mxu2 %v320_v34 }
 0x1d3   :  { %v456_v39 = vpop.eup %455  ;;  %342 = vmatpush.msra.mxu2 %v319_v35 }
 0x1d4   :  { %v458_v40 = vpop.eup %457  ;;  %v190_v41 = vsel %vm165_vm1, %v456_v39, 0.0 }
 0x1d5   :  { %v191_v42 = vrot.slane %v190_v41, 4  ;;  %v197_v43 = vsel %vm165_vm1, %v458_v40, 0.0  ;;  %343 = vmatpush.msra.mxu2 %v318_v36 }
 0x1d6   :  { %v198_v44 = vrot.slane %v197_v43, 4 }
 0x1d7   :  { %v192_v45 = vadd.f32 %v191_v42, %v190_v41  ;;  %344 = vmatpush.msra.mxu2 %v317_v37  ;;  %v313_v41 = vld [vmem:[%s699_s3] sm:$0xff]  ;;  %v357_v42 = vld [vmem:[%s701_s5 + $0x18] sm:$0xff] }
 0x1d8   :  { %v199_v46 = vadd.f32 %v198_v44, %v197_v43  ;;  %v356_v43 = vld [vmem:[%s701_s5 + $0x10] sm:$0xff] }
 0x1d9   :  { %v193_v47 = vrot.slane %v192_v45, 2  ;;  %345 = vmatpush.msra.mxu2 %v316_v38 }
 0x1da   :  { %v200_v48 = vrot.slane %v199_v46, 2 }
 0x1db   :  { %v194_v49 = vadd.f32 %v193_v47, %v192_v45 }
 0x1dc   :  { %v201_v50 = vadd.f32 %v200_v48, %v199_v46 }
 0x1dd   :  { %v195_v51 = vrot.slane %v194_v49, 1 }
 0x1de   :  { %v202_v52 = vrot.slane %v201_v50, 1 }
 0x1df   :  { %v196_v53 = vadd.f32 %v195_v51, %v194_v49  ;;  %v354_v51 = vld [vmem:[%s701_s5] sm:$0xff] }
 0x1e0   :  { %v203_v54 = vadd.f32 %v202_v52, %v201_v50  ;;  %v355_v50 = vld [vmem:[%s701_s5 + $0x8] sm:$0xff]  ;;  %v449_v52 = vld [vmem:[%s700_s4] ss:$0 sm:$0xff]  ;;  %s522_s4 = smov [#allocation4]  }
 0x1e1   :  { %v204_v55 = vsel %vm180_vm2, %v196_v53, 0.0  ;;  %s414_s5 = sshll.u32 %s522_s4, 4  ;;  %s415_s5 = int_to_ptr.vmem [resolvable:$true] %s414_s5 }
 0x1e2   :  { %v205_v56 = vsel %vm180_vm2, %v203_v54, 0.0 }
 0x1e3   :  { %v206_v57 = vadd.f32 %v205_v56, %v204_v55  ;;  %v450_v56 = vld [vmem:[%s702_s6] ss:$0 sm:$0xff]  ;;  %s416_s6 = sshll.u32 %s704_s8, 4  ;;  %s417_s6 = int_to_ptr.hbm [resolvable:$true] %s416_s6 }
 0x1e5   :  { %459 = vrcp.f32 %v206_v57  ;;  %v218_v61 = vand.u32 2147483648, %v206_v57  ;;  %v216_v63 = vand.u32 2147483647, %v206_v57  ;;  %vm212_vm4 = vweird.f32 %v206_v57 }
 0x1e7   :  { %v219_v1 = vor.u32 1.1754944e-38, %v218_v61  ;;  %vm217_vm6 = vcmp.eq.f32.partialorder %v216_v63, 8.507059e+37 }
 0x1eb   :  { %v460_v58 = vpop.eup %459 }
 0x1ec   :  { %v208_v59 = vmul.f32 %v460_v58, %v206_v57  ;;  %vm213_vm3 = vweird.f32 %v460_v58 }
 0x1ed   :  { %vm214_vm5 = vmor %vm212_vm4, %vm213_vm3 }
 0x1ee   :  { %v209_v60 = vsub.f32 1.0, %v208_v59 }
 0x1f0   :  { %v210_v62 = vmul.f32 %v460_v58, %v209_v60 }
 0x1f2   :  { %v211_v0 = vadd.f32 %v460_v58, %v210_v62 }
 0x1f4   :  { %v215_v2 = vsel %vm214_vm5, %v460_v58, %v211_v0 }
 0x1f5   :  { %v220_v3 = vsel %vm217_vm6, %v219_v1, %v215_v2 }
 0x1f6   :  { %v221_v4 = vmul.f32 %v456_v39, %v220_v3  ;;  %v222_v5 = vmul.f32 %v458_v40, %v220_v3  ;;  %v315_v39 = vld [vmem:[%s699_s3 + $0x10] sm:$0xff]  ;;  %v314_v40 = vld [vmem:[%s699_s3 + $0x8] sm:$0xff] }
 0x1f7   :  { %346 = vmatpush.msra.mxu2 %v315_v39 }
 0x1f8   :  { %223 = vst.msk [vmem:[#allocation4] sm:$0xf] %vm165_vm1, %v221_v4  ;;  %437 = vmatmul.msk.f32.vlgmr.msra.gmra.mxu3 %vm180_vm2, %v221_v4 }
 0x1f9   :  { %224 = vst.msk [vmem:[#allocation4 + $0x4] sm:$0xf] %vm165_vm1, %v222_v5  ;;  %347 = vmatpush.msra.mxu2 %v314_v40  ;;  %377 = vmatpush.msra.mxu3 %v357_v42 }
 0x1fa   :  { %422 = dma.vmem_to_hbm [thread:$0]  %s415_s5, 128, %s417_s6, [#allocation5], %s521_s24, %s521_s24, %s523_s22  }
 0x1fb   :  { %348 = vmatpush.msra.mxu2 %v313_v41  ;;  %378 = vmatpush.msra.mxu3 %v356_v43 }
 0x1fd   :  { %379 = vmatpush.msra.mxu3 %v355_v50 }
 0x1ff   :  { %380 = vmatpush.msra.mxu3 %v354_v51 }
 0x200   :  { %438 = vmatmul.msk.f32.vlgmr.msrb.gmra.mxu3 %vm180_vm2, %v222_v5 }
 0x27b   :  { %v245_v8 = vpop.f32.mrf.mxu3 }
 0x27c   :  { %v274_v12 = vperm.slane %v245_v8, %v273_v9 }
 0x27e   :  { %v282_v15 = vrot.slane %v274_v12, 4 }
 0x283   :  { %v268_v13 = vpop.f32.mrf.mxu3 }
 0x284   :  { %v278_v16 = vperm.slane %v268_v13, %v273_v9 }
 0x286   :  { %v279_v17 = vrot.slane %v278_v16, 4  ;;  %v283_v18 = vsel %vm280_vm7, %v278_v16, %v282_v15 }
 0x287   :  { %v291_v19 = vperm.slane %v283_v18, %v286_v14 }
 0x288   :  { %v281_v20 = vsel %vm280_vm7, %v279_v17, %v274_v12 }
 0x289   :  { %v294_v21 = vrot.slane %v291_v19, 4  ;;  %v287_v22 = vperm.slane %v281_v20, %v286_v14 }
 0x28b   :  { %v295_v23 = vsel %vm280_vm7, 0.0, %v294_v21  ;;  %v292_v24 = vrot.slane %v287_v22, 4 }
 0x28c   :  { %305 = vrot.lane.b32.xlu2 %v295_v23, %s519_s2  ;;  %s524_s2 = smov [#allocation2]  }
 0x28d   :  { %v293_v25 = vsel %vm280_vm7, 0.0, %v292_v24 }
 0x28e   :  { %297 = vrot.lane.b32.xlu1 %v293_v25, %s520_s23  ;;  %s404_s23 = sshll.u32 %s524_s2, 4  ;;  %s405_s23 = int_to_ptr.vmem [resolvable:$true] %s404_s23 }
 0x296   :  { %301 = vrot.lane.b32.xlu1 %v291_v19, %s521_s24 }
 0x2e6   :  { %v306_v47 = vpop.permute.xlu2 %305 }
 0x300   :  { %v298_v44 = vpop.permute.xlu1 %297 }
 0x301   :  { %v308_v45 = vsel %vm36_vm0, %v287_v22, %v298_v44 }
 0x308   :  { %v302_v46 = vpop.permute.xlu1 %301 }
 0x309   :  { %v310_v48 = vsel %vm309_vm8, %v308_v45, %v302_v46 }
 0x30a   :  { %v312_v49 = vsel %vm311_vm9, %v310_v48, %v306_v47 }
 0x30b   :  { %349 = vmatmul.f32.vlgmr.msra.gmra.mxu2 %v312_v49 }
 0x38e   :  { %v350_v53 = vpop.f32.mrf.mxu2 }
 0x38f   :  { %v351_v54 = vadd.f32 %v449_v52, %v350_v53 }
 0x391   :  { %v353_v55 = vmax.f32 %v351_v54, 0.0 }
 0x393   :  { %439 = vmatmul.msk.f32.vlgmr.msra.gmra.mxu3 %vm36_vm0, %v353_v55 }
 0x416   :  { %v382_v57 = vpop.f32.mrf.mxu3 }
 0x417   :  { %v383_v58 = vadd.f32 %v450_v56, %v382_v57 }
 0x419   :  { %v386_v59 = vsel %vm385_vm10, %v383_v58, -inf }
 0x41a   :  { %387 = vmax.xlane.f32.xlu2 %v386_v59 }
 0x48d   :  { %v388_v60 = vpop.xlane.xlu2 %387 }
 0x48e   :  { %v389_v61 = vsub.f32 %v383_v58, %v388_v60 }
 0x490   :  { %v390_v62 = vmul.f32 1.442695, %v389_v61 }
 0x492   :  { %461 = vpow2.f32 %v390_v62 }
 0x498   :  { %v462_v63 = vpop.eup %461 }
 0x499   :  { %v392_v0 = vsel %vm385_vm10, %v462_v63, 0.0 }
 0x49a   :  { %393 = vadd.xlane.f32.xlu0 %v392_v0 }
 0x50d   :  { %v394_v1 = vpop.xlane.xlu0 %393 }
 0x50e   :  { %463 = vlog2.f32 %v394_v1 }
 0x514   :  { %v464_v2 = vpop.eup %463 }
 0x515   :  { %v396_v3 = vmul.f32 0.6931472, %v464_v2 }
 0x517   :  { %v397_v4 = vsub.f32 %v389_v61, %v396_v3 }
 0x519   :  { %398 = vst.msk [vmem:[#allocation2] sm:$0x3] %vm385_vm10, %v397_v4 }
 0x51a   :  { %409 = dma.vmem_to_hbm [thread:$0]  %s405_s23, 32, %s407_s27, [#allocation3]  }
 0x51b   :  { %513 = dma.done.wait [#allocation3], 32  }
 0x51c   :  { %514 = vsyncadd [#allocation3], 4294967264 }
 0x51d   :  { %515 = dma.done.wait [#allocation5], 128  }
 0x51e   :  { %516 = vsyncadd [#allocation5], 4294967168 }
 0x51f   :  { %431 = vsyncpa [#allocation3], 1 }
 0x520   :  { %432 = vsyncpa [#allocation5], 1 }

</bundles_post_ra>
